<compile_context>
chip_gen: v7x
topology: tpu7x:2x2x1
jax: 0.10.0
libtpu: 0.0.40
codegen_flags: <defaults>
</compile_context>

<pallas_src>
import functools

import numpy as np
import jax
import jax.numpy as jnp
from jax.experimental import pallas as pl
from jax.experimental.pallas import tpu as pltpu


def upsample_kernel(x_ref, v_ref, u_ref, p_ref, a_ref, o_ref, *, wo, kh):
    # x_ref: (B, H, Cin*W)          input rows; lanes ordered (cin, ix)
    # v_ref: (Cin*W, kH*Cout*Wo)    x-direction transposed-conv weights
    # u_ref: (Ho, kH*H)             y-direction scatter matrix (0/1)
    # p_ref: (Cout*Wo, Cout*Wo)     channel-broadcast matrix kron(I_Cout, 1_{Wo x Wo})
    # a_ref: (1, Cout*Wo)           PReLU slope broadcast per channel (lane-aligned)
    # o_ref: (B, Ho, Cout*Wo)       lane-dense output slab (wrapper restores NCHW)
    B, H, CinW = x_ref.shape
    Ho = o_ref.shape[1]
    CWo = o_ref.shape[2]

    # ---- Stage 1: single (B*H, Cin*W) @ (Cin*W, kH*Cout*Wo) MXU pass. ----
    x2 = x_ref[...].reshape(B * H, CinW)
    z = jnp.dot(x2, v_ref[...], preferred_element_type=jnp.float32)  # (B*H, kH*CWo)

    inv_area = jnp.float32(1.0 / (Ho * wo))
    alpha_row = a_ref[...]                                  # (1, CWo)
    u = u_ref[...]                                          # (Ho, kH*H)
    p = p_ref[...]                                          # (CWo, CWo)

    for b in range(B):
        zb = z[b * H:(b + 1) * H, :]                        # (H, kH*CWo)
        # Stack the kH lane blocks along sublanes -> (kH*H, CWo); lane offsets are
        # multiples of 128 so these are cheap copies.
        zc = jnp.concatenate(
            [zb[:, k * CWo:(k + 1) * CWo] for k in range(kh)], axis=0)
        # ---- Stage 2: y-direction scatter/upsample, one K=kH*H MXU pass. ----
        y = jnp.dot(u, zc, preferred_element_type=jnp.float32)       # (Ho, CWo)

        # ---- InstanceNorm2d (conv bias cancelled by mean subtraction) + PReLU. ----
        colsum = jnp.sum(y, axis=0, keepdims=True)                    # (1, CWo)
        colsq = jnp.sum(y * y, axis=0, keepdims=True)                 # (1, CWo)
        mean = jnp.dot(colsum, p, preferred_element_type=jnp.float32) * inv_area
        ex2 = jnp.dot(colsq, p, preferred_element_type=jnp.float32) * inv_area
        var = jnp.maximum(ex2 - mean * mean, jnp.float32(0.0))        # guard cancellation
        yn = (y - mean) * jax.lax.rsqrt(var + jnp.float32(1e-5))
        yo = jnp.where(yn >= 0, yn, alpha_row * yn)
        o_ref[b] = yo.astype(o_ref.dtype)                             # lane-dense store


def _build_upsample_mats(w_t, H, W, stride, padding):
    """Build the x-direction weight matrix V2 and y-direction scatter matrix Uall.

    out[o, oy, ox] = sum_{i, iy, ix, a, b} x[i, iy, ix] * w_t[i, o, a, b]
                     * [oy == stride*iy - padding + a] * [ox == stride*ix - padding + b]
    which is exactly ConvTranspose2d(stride, padding) with output_padding=0.
    """
    Cin, Cout, kH, kW = w_t.shape
    Ho = (H - 1) * stride - 2 * padding + kH
    Wo = (W - 1) * stride - 2 * padding + kW

    # Mx[b, x, z] = [z == stride*x - padding + b]     (kW, W, Wo)
    b_i = np.arange(kW)[:, None, None]
    x_i = np.arange(W)[None, :, None]
    z_i = np.arange(Wo)[None, None, :]
    Mx = (z_i == stride * x_i - padding + b_i).astype(np.float32)

    # Uall[oy, a*H + iy] = [oy == stride*iy - padding + a]   (Ho, kH*H)
    oy_i = np.arange(Ho)[:, None, None]
    a_i = np.arange(kH)[None, :, None]
    iy_i = np.arange(H)[None, None, :]
    Uall = (oy_i == stride * iy_i - padding + a_i).astype(np.float32)
    Uall = Uall.reshape(Ho, kH * H)

    # V2[(i,x), (a,o,z)] = sum_b w_t[i,o,a,b] * Mx[b,x,z]
    V = jnp.einsum('ioab,bxz->ixaoz', w_t.astype(jnp.float32), jnp.asarray(Mx))
    V2 = V.reshape(Cin * W, kH * Cout * Wo)
    return jnp.asarray(Uall), V2, Ho, Wo


def _pick_batch_block(N, H):
    """B images per grid step: fill ~128 MXU rows, but keep >=2 grid steps when
    N >= 2 so the batch axis can still shard across TensorCores."""
    cap = max(1, 128 // max(H, 1))
    if N >= 2:
        cap = min(cap, N // 2)
    cap = max(1, min(cap, N))
    for b in range(cap, 0, -1):
        if N % b == 0:
            return b
    return 1


@functools.partial(jax.jit, static_argnames=("stride", "padding"))
def upsample_forward(x_nchw, w_t, bias, alpha, *, stride=2, padding=1):
    """x_nchw: (N, Cin, H, W); w_t: ConvTranspose2d weight (Cin, Cout, kH, kW)."""
    N, Cin, H, W = x_nchw.shape
    Cin_w, Cout, kH, kW = w_t.shape
    assert Cin_w == Cin

    Uall, V2, Ho, Wo = _build_upsample_mats(w_t, H, W, stride, padding)
    CWo = Cout * Wo

    # Conv bias is mathematically dead: InstanceNorm's mean subtraction cancels any
    # per-channel constant and it does not change the variance -> not passed to kernel.
    del bias

    # PReLU slope: supports shared (num_parameters=1) or per-channel; broadcast to a
    # lane-aligned (1, Cout*Wo) row.
    alpha_arr = jnp.broadcast_to(jnp.asarray(alpha, jnp.float32).reshape(-1), (Cout,))
    alpha_row = jnp.repeat(alpha_arr, Wo).reshape(1, CWo)

    # One-hot channel-broadcast matrix: (colsum @ P)[c*Wo+ox] = per-channel sum.
    P = jnp.asarray(
        np.kron(np.eye(Cout, dtype=np.float32), np.ones((Wo, Wo), np.float32)))

    # Pre-permute input to (N, H, Cin*W): rows = iy, lanes = (cin, ix).  Tiny.
    x_perm = jnp.transpose(x_nchw.astype(jnp.float32), (0, 2, 1, 3)).reshape(
        N, H, Cin * W)

    B = _pick_batch_block(N, H)
    kernel = functools.partial(upsample_kernel, wo=Wo, kh=kH)

    out = pl.pallas_call(
        kernel,
        out_shape=jax.ShapeDtypeStruct((N, Ho, CWo), jnp.float32),
        grid=(N // B,),
        in_specs=[
            pl.BlockSpec((B, H, Cin * W), lambda n: (n, 0, 0)),
            pl.BlockSpec((Cin * W, kH * CWo), lambda n: (0, 0)),
            pl.BlockSpec((Ho, kH * H), lambda n: (0, 0)),
            pl.BlockSpec((CWo, CWo), lambda n: (0, 0)),
            pl.BlockSpec((1, CWo), lambda n: (0, 0)),
        ],
        out_specs=pl.BlockSpec((B, Ho, CWo), lambda n: (n, 0, 0)),
        compiler_params=pltpu.CompilerParams(
            dimension_semantics=("parallel",)),
    )(x_perm, V2, Uall, P, alpha_row)

    # Lane-dense slab -> NCHW (cheap wrapper-side layout fixup).
    return out.reshape(N, Ho, Cout, Wo).transpose(0, 2, 1, 3)


def reference_forward(x_nchw, w_t, bias, alpha, *, stride=2, padding=1):
    """Pure-JAX reference of the same math (for verification)."""
    N, Cin, H, W = x_nchw.shape
    _, Cout, kH, kW = w_t.shape
    x = jnp.transpose(x_nchw, (0, 2, 3, 1)).astype(jnp.float32)
    Hd, Wd = (H - 1) * stride + 1, (W - 1) * stride + 1
    x_dil = jnp.zeros((N, Hd, Wd, Cin), jnp.float32)
    x_dil = x_dil.at[:, ::stride, ::stride, :].set(x)
    pad = kH - 1 - padding
    x_pad = jnp.pad(x_dil, ((0, 0), (pad, pad), (pad, pad), (0, 0)))
    w_hwio = jnp.transpose(w_t[:, :, ::-1, ::-1], (2, 3, 0, 1)).astype(jnp.float32)
    y = jax.lax.conv_general_dilated(
        x_pad, w_hwio, window_strides=(1, 1), padding="VALID",
        dimension_numbers=("NHWC", "HWIO", "NHWC"))
    y = y + jnp.asarray(bias, jnp.float32)[None, None, None, :]
    mean = jnp.mean(y, axis=(1, 2), keepdims=True)
    var = jnp.mean((y - mean) ** 2, axis=(1, 2), keepdims=True)
    y = (y - mean) / jnp.sqrt(var + 1e-5)
    y = jnp.where(y >= 0, y, jnp.asarray(alpha, jnp.float32) * y)
    return jnp.transpose(y, (0, 3, 1, 2))


if __name__ == "__main__":
    # UpSample(in_channels=4, out_channels=8, kernel_size=4, stride=2, padding=1)
    N, Cin, H, W = 2, 4, 16, 16
    Cout, k = 8, 4

    key = jax.random.PRNGKey(0)
    kx, kw, kb = jax.random.split(key, 3)
    x = jax.random.normal(kx, (N, Cin, H, W), jnp.float32)
    # ConvTranspose2d weight layout: (in_channels, out_channels, kH, kW)
    w_t = jax.random.normal(kw, (Cin, Cout, k, k), jnp.float32) * 0.1
    bias = jax.random.normal(kb, (Cout,), jnp.float32) * 0.1
    alpha = jnp.float32(0.25)  # nn.PReLU() default init (num_parameters=1)

    out = upsample_forward(x, w_t, bias, alpha, stride=2, padding=1)
    out = jax.block_until_ready(out)
    assert out.shape == (N, Cout, 2 * H, 2 * W), out.shape

    ref = jax.block_until_ready(
        reference_forward(x, w_t, bias, alpha, stride=2, padding=1))
    # Tolerance sized for the MXU's default f32 matmul path (bf16 passes at DEFAULT
    # precision); typical observed difference is far smaller, and any indexing bug
    # would produce O(1) errors on the unit-variance output.
    max_err = float(jnp.max(jnp.abs(out - ref)))
    assert max_err < 2e-2, max_err

    print("KERNEL_OK")
</pallas_src>

<mosaic_0001>
module attributes {stable_mosaic.version = 11 : i64} {
  func.func @upsample_kernel(%arg0: i32, %arg1: memref<1x16x64xf32, #tpu.memory_space<vmem>>, %arg2: memref<64x1024xf32, #tpu.memory_space<vmem>>, %arg3: memref<32x64xf32, #tpu.memory_space<vmem>>, %arg4: memref<256x256xf32, #tpu.memory_space<vmem>>, %arg5: memref<1x256xf32, #tpu.memory_space<vmem>>, %arg6: memref<1x32x256xf32, #tpu.memory_space<vmem>>) attributes {dimension_semantics = [#tpu.dimension_semantics<parallel>], iteration_bounds = array<i64: 2>, scalar_prefetch = 0 : i64, scratch_operands = 0 : i64, tpu.core_type = #tpu.core_type<tc>, window_params = [{transform_indices = @transform_0, window_bounds = array<i64: 1, 16, 64>}, {pipeline_mode = #tpu.pipeline_mode<synchronous>, transform_indices = @transform_1, window_bounds = array<i64: 64, 1024>}, {pipeline_mode = #tpu.pipeline_mode<synchronous>, transform_indices = @transform_2, window_bounds = array<i64: 32, 64>}, {pipeline_mode = #tpu.pipeline_mode<synchronous>, transform_indices = @transform_3, window_bounds = array<i64: 256, 256>}, {pipeline_mode = #tpu.pipeline_mode<synchronous>, transform_indices = @transform_4, window_bounds = array<i64: 1, 256>}, {transform_indices = @transform_5, window_bounds = array<i64: 1, 32, 256>}]} {
    %c0 = arith.constant 0 : index
    %c0_0 = arith.constant 0 : index
    %c0_1 = arith.constant 0 : index
    %0 = vector.load %arg1[%c0, %c0_0, %c0_1] : memref<1x16x64xf32, #tpu.memory_space<vmem>>, vector<1x16x64xf32>
    %1 = vector.shape_cast %0 : vector<1x16x64xf32> to vector<16x64xf32>
    %c0_2 = arith.constant 0 : index
    %c0_3 = arith.constant 0 : index
    %2 = vector.load %arg2[%c0_2, %c0_3] : memref<64x1024xf32, #tpu.memory_space<vmem>>, vector<64x1024xf32>
    %cst = arith.constant dense<0.000000e+00> : vector<16x1024xf32>
    %3 = tpu.matmul %1, %2, %cst {dimension_numbers = #tpu.dot_dimension_numbers<[1], [0], [0], [1], [0, 0, 1, 1], [], []>} : vector<16x64xf32>, vector<64x1024xf32>, vector<16x1024xf32> -> vector<16x1024xf32>
    %c0_4 = arith.constant 0 : index
    %c0_5 = arith.constant 0 : index
    %4 = vector.load %arg5[%c0_4, %c0_5] : memref<1x256xf32, #tpu.memory_space<vmem>>, vector<1x256xf32>
    %c0_6 = arith.constant 0 : index
    %c0_7 = arith.constant 0 : index
    %5 = vector.load %arg3[%c0_6, %c0_7] : memref<32x64xf32, #tpu.memory_space<vmem>>, vector<32x64xf32>
    %c0_8 = arith.constant 0 : index
    %c0_9 = arith.constant 0 : index
    %6 = vector.load %arg4[%c0_8, %c0_9] : memref<256x256xf32, #tpu.memory_space<vmem>>, vector<256x256xf32>
    %7 = vector.extract_strided_slice %3 {offsets = [0, 0], sizes = [16, 256], strides = [1, 1]} : vector<16x1024xf32> to vector<16x256xf32>
    %8 = vector.extract_strided_slice %3 {offsets = [0, 256], sizes = [16, 256], strides = [1, 1]} : vector<16x1024xf32> to vector<16x256xf32>
    %9 = vector.extract_strided_slice %3 {offsets = [0, 512], sizes = [16, 256], strides = [1, 1]} : vector<16x1024xf32> to vector<16x256xf32>
    %10 = vector.extract_strided_slice %3 {offsets = [0, 768], sizes = [16, 256], strides = [1, 1]} : vector<16x1024xf32> to vector<16x256xf32>
    %11 = tpu.concatenate %7, %8, %9, %10 in 0 : vector<16x256xf32>, vector<16x256xf32>, vector<16x256xf32>, vector<16x256xf32> -> vector<64x256xf32>
    %cst_10 = arith.constant dense<0.000000e+00> : vector<32x256xf32>
    %12 = tpu.matmul %5, %11, %cst_10 {dimension_numbers = #tpu.dot_dimension_numbers<[1], [0], [0], [1], [0, 0, 1, 1], [], []>} : vector<32x64xf32>, vector<64x256xf32>, vector<32x256xf32> -> vector<32x256xf32>
    %cst_11 = arith.constant dense<0.000000e+00> : vector<256xf32>
    %13 = vector.multi_reduction <add>, %12, %cst_11 [0] : vector<32x256xf32> to vector<256xf32>
    %14 = vector.shape_cast %13 : vector<256xf32> to vector<1x256xf32>
    %15 = arith.mulf %12, %12 : vector<32x256xf32>
    %cst_12 = arith.constant dense<0.000000e+00> : vector<256xf32>
    %16 = vector.multi_reduction <add>, %15, %cst_12 [0] : vector<32x256xf32> to vector<256xf32>
    %17 = vector.shape_cast %16 : vector<256xf32> to vector<1x256xf32>
    %cst_13 = arith.constant dense<0.000000e+00> : vector<1x256xf32>
    %18 = tpu.matmul %14, %6, %cst_13 {dimension_numbers = #tpu.dot_dimension_numbers<[1], [0], [0], [1], [0, 0, 1, 1], [], []>} : vector<1x256xf32>, vector<256x256xf32>, vector<1x256xf32> -> vector<1x256xf32>
    %cst_14 = arith.constant 9.765625E-4 : f32
    %19 = vector.broadcast %cst_14 : f32 to vector<1x256xf32>
    %20 = arith.mulf %18, %19 : vector<1x256xf32>
    %cst_15 = arith.constant dense<0.000000e+00> : vector<1x256xf32>
    %21 = tpu.matmul %17, %6, %cst_15 {dimension_numbers = #tpu.dot_dimension_numbers<[1], [0], [0], [1], [0, 0, 1, 1], [], []>} : vector<1x256xf32>, vector<256x256xf32>, vector<1x256xf32> -> vector<1x256xf32>
    %cst_16 = arith.constant 9.765625E-4 : f32
    %22 = vector.broadcast %cst_16 : f32 to vector<1x256xf32>
    %23 = arith.mulf %21, %22 : vector<1x256xf32>
    %24 = arith.mulf %20, %20 : vector<1x256xf32>
    %25 = arith.subf %23, %24 : vector<1x256xf32>
    %cst_17 = arith.constant 0.000000e+00 : f32
    %26 = vector.broadcast %cst_17 : f32 to vector<1x256xf32>
    %27 = arith.maximumf %25, %26 : vector<1x256xf32>
    %28 = vector.broadcast %20 : vector<1x256xf32> to vector<32x256xf32>
    %29 = arith.subf %12, %28 : vector<32x256xf32>
    %cst_18 = arith.constant 9.99999974E-6 : f32
    %30 = vector.broadcast %cst_18 : f32 to vector<1x256xf32>
    %31 = arith.addf %27, %30 : vector<1x256xf32>
    %32 = math.rsqrt %31 : vector<1x256xf32>
    %33 = vector.broadcast %32 : vector<1x256xf32> to vector<32x256xf32>
    %34 = arith.mulf %29, %33 : vector<32x256xf32>
    %cst_19 = arith.constant 0.000000e+00 : f32
    %35 = vector.broadcast %cst_19 : f32 to vector<32x256xf32>
    %36 = arith.cmpf oge, %34, %35 : vector<32x256xf32>
    %37 = vector.broadcast %4 : vector<1x256xf32> to vector<32x256xf32>
    %38 = arith.mulf %37, %34 : vector<32x256xf32>
    %39 = arith.select %36, %34, %38 : vector<32x256xi1>, vector<32x256xf32>
    %c0_20 = arith.constant 0 : index
    %c0_21 = arith.constant 0 : index
    %c0_22 = arith.constant 0 : index
    %40 = vector.load %arg6[%c0_20, %c0_21, %c0_22] : memref<1x32x256xf32, #tpu.memory_space<vmem>>, vector<1x32x256xf32>
    %41 = vector.shape_cast %40 : vector<1x32x256xf32> to vector<32x256xf32>
    %42 = vector.shape_cast %39 : vector<32x256xf32> to vector<1x32x256xf32>
    tpu.vector_store %arg6[%c0_20, %c0_21, %c0_22], %42 {strides = array<i32>} : memref<1x32x256xf32, #tpu.memory_space<vmem>>, vector<1x32x256xf32>,
    return
  }
  func.func @transform_0(%arg0: i32) -> (i32, i32, i32) {
    %c0_i32 = arith.constant 0 : i32
    %c0_i32_0 = arith.constant 0 : i32
    %c0_i32_1 = arith.constant 0 : i32
    return %arg0, %c0_i32, %c0_i32_0 : i32, i32, i32
  }
  func.func @transform_1(%arg0: i32) -> (i32, i32) {
    %c0_i32 = arith.constant 0 : i32
    %c0_i32_0 = arith.constant 0 : i32
    %c0_i32_1 = arith.constant 0 : i32
    return %c0_i32, %c0_i32_0 : i32, i32
  }
  func.func @transform_2(%arg0: i32) -> (i32, i32) {
    %c0_i32 = arith.constant 0 : i32
    %c0_i32_0 = arith.constant 0 : i32
    %c0_i32_1 = arith.constant 0 : i32
    return %c0_i32, %c0_i32_0 : i32, i32
  }
  func.func @transform_3(%arg0: i32) -> (i32, i32) {
    %c0_i32 = arith.constant 0 : i32
    %c0_i32_0 = arith.constant 0 : i32
    %c0_i32_1 = arith.constant 0 : i32
    return %c0_i32, %c0_i32_0 : i32, i32
  }
  func.func @transform_4(%arg0: i32) -> (i32, i32) {
    %c0_i32 = arith.constant 0 : i32
    %c0_i32_0 = arith.constant 0 : i32
    %c0_i32_1 = arith.constant 0 : i32
    return %c0_i32, %c0_i32_0 : i32, i32
  }
  func.func @transform_5(%arg0: i32) -> (i32, i32, i32) {
    %c0_i32 = arith.constant 0 : i32
    %c0_i32_0 = arith.constant 0 : i32
    %c0_i32_1 = arith.constant 0 : i32
    return %arg0, %c0_i32, %c0_i32_0 : i32, i32, i32
  }
}

</mosaic_0001>

<bundles_post_ra>
// kernel: upsample_forward.1
= control target key start
LH: loop header
LB: loop body
LE: loop exit
PB: predicated region body
PF: predicated region fallthrough
CT: control target
= control target key end

     0   :  { %s1391_s18 = smov 0   ;;  %s1975_s0 = inlined_call_operand.vmem [shape: f32[2,16,64], index: 0, kind: input, shape index: {}]   ;;  %s1976_s1 = inlined_call_operand.vmem [shape: f32[64,1024], index: 1, kind: input, shape index: {}]   ;;  %s1977_s2 = inlined_call_operand.vmem [shape: f32[32,64], index: 2, kind: input, shape index: {}]   ;;  %s1978_s3 = inlined_call_operand.vmem [shape: f32[256,256], index: 3, kind: input, shape index: {}]   ;;  %s1979_s4 = inlined_call_operand.vmem [shape: f32[1,256], index: 4, kind: input, shape index: {}]   ;;  %s1980_s5 = inlined_call_operand.vmem [shape: f32[2,32,256], index: 5, kind: output, shape index: {}]  }
   0x1 LB: > { %s1106_s19 = sadd.s32 4294967295, %s1358_s18   ;;  %p1110_p0 = scmp.ge.s32.totalorder %s1358_s18, 1  ;;  %s1358_s18 = sphi %s1391_s18, %s15_s18  }
   0x2   : > { %p187_p1 = scmp.lt.s32.totalorder %s1358_s18, 3 }
   0x4   : > { %p188_p2 = pnand %p1110_p0, %p187_p1 }
   0x5   : > { %v228_v0 = vld [vmem:[%s1976_s1 + $0x8] sm:$0xff] (!%p188_p2)  ;;  %v230_v2 = vld [vmem:[%s1976_s1 + $0x18] sm:$0xff] (!%p188_p2)  ;;  %v227_v5 = vld [vmem:[%s1976_s1] sm:$0xff] (!%p188_p2)  ;;  %v1360_v7 = vmov (!%p188_p2), 0.0   ;;  %p1430_p3 = scmp.lt.s32.totalorder (!%p188_p2), %s1106_s19, 1  ;;  %vm291_vm0 = vcmask (!%p188_p2), 523264  }
   0x6   : > { %191 = sbr.rel (%p188_p2) target bundleno = 756 (0x2f4), region = 40  ;;  %v236_v1 = vld [vmem:[%s1976_s1 + $0x48] sm:$0xff] (!%p188_p2)  ;;  %v238_v4 = vld [vmem:[%s1976_s1 + $0x58] sm:$0xff] (!%p188_p2)  ;;  %v235_v6 = vld [vmem:[%s1976_s1 + $0x40] sm:$0xff] (!%p188_p2)  ;;  %362 = vmatprep.mubr.f32.mxu0 (!%p188_p2), %v1360_v7  ;;  %439 = vmatprep.mubr.f32.mxu1 (!%p188_p2), %v1360_v7 }
   0x7   : > { %v1131_v3 = vpack.c.bf16 (!%p188_p2), %v236_v1, %v228_v0  ;;  %v1147_v8 = vpack.c.bf16 (!%p188_p2), %v238_v4, %v230_v2  ;;  %v1133_v9 = vpack.c.bf16 (!%p188_p2), %v235_v6, %v227_v5  ;;  %v229_v10 = vld [vmem:[%s1976_s1 + $0x10] sm:$0xff] (!%p188_p2)  ;;  %v244_v12 = vld [vmem:[%s1976_s1 + $0x88] sm:$0xff] (!%p188_p2)  ;;  %v246_v15 = vld [vmem:[%s1976_s1 + $0x98] sm:$0xff] (!%p188_p2) }
   0x8   : > { %v237_v11 = vld [vmem:[%s1976_s1 + $0x50] sm:$0xff] (!%p188_p2)  ;;  %v252_v14 = vld [vmem:[%s1976_s1 + $0xc8] sm:$0xff] (!%p188_p2)  ;;  %v254_v16 = vld [vmem:[%s1976_s1 + $0xd8] sm:$0xff] (!%p188_p2) }
   0x9   : > { %1132 = vmatprep.subr.bf16.mxu0 (!%p188_p2), %v1131_v3  ;;  %v1149_v13 = vpack.c.bf16 (!%p188_p2), %v237_v11, %v229_v10  ;;  %1148 = vmatprep.subr.bf16.mxu1 (!%p188_p2), %v1147_v8  ;;  %v1135_v17 = vpack.c.bf16 (!%p188_p2), %v252_v14, %v244_v12  ;;  %v1151_v18 = vpack.c.bf16 (!%p188_p2), %v254_v16, %v246_v15  ;;  %v243_v19 = vld [vmem:[%s1976_s1 + $0x80] sm:$0xff] (!%p188_p2)  ;;  %v245_v21 = vld [vmem:[%s1976_s1 + $0x90] sm:$0xff] (!%p188_p2)  ;;  %v260_v24 = vld [vmem:[%s1976_s1 + $0x108] sm:$0xff] (!%p188_p2) }
   0xa   : > { %1134 = vmatpush1.bf16.msra.mxu0 (!%p188_p2), %v1133_v9  ;;  %v251_v20 = vld [vmem:[%s1976_s1 + $0xc0] sm:$0xff] (!%p188_p2)  ;;  %v253_v23 = vld [vmem:[%s1976_s1 + $0xd0] sm:$0xff] (!%p188_p2)  ;;  %v268_v25 = vld [vmem:[%s1976_s1 + $0x148] sm:$0xff] (!%p188_p2) }
   0xb   : > { %1150 = vmatpush1.bf16.msra.mxu1 (!%p188_p2), %v1149_v13  ;;  %v1137_v22 = vpack.c.bf16 (!%p188_p2), %v251_v20, %v243_v19  ;;  %1136 = vmatprep.subr.bf16.mxu0 (!%p188_p2), %v1135_v17  ;;  %v1153_v26 = vpack.c.bf16 (!%p188_p2), %v253_v23, %v245_v21  ;;  %v1139_v27 = vpack.c.bf16 (!%p188_p2), %v268_v25, %v260_v24  ;;  %v262_v28 = vld [vmem:[%s1976_s1 + $0x118] sm:$0xff] (!%p188_p2)  ;;  %v259_v30 = vld [vmem:[%s1976_s1 + $0x100] sm:$0xff] (!%p188_p2)  ;;  %v261_v33 = vld [vmem:[%s1976_s1 + $0x110] sm:$0xff] (!%p188_p2) }
   0xc   : > { %1152 = vmatprep.subr.bf16.mxu1 (!%p188_p2), %v1151_v18  ;;  %v270_v29 = vld [vmem:[%s1976_s1 + $0x158] sm:$0xff] (!%p188_p2)  ;;  %v267_v32 = vld [vmem:[%s1976_s1 + $0x140] sm:$0xff] (!%p188_p2)  ;;  %v269_v34 = vld [vmem:[%s1976_s1 + $0x150] sm:$0xff] (!%p188_p2) }
   0xd   : > { %s1983_s19 = smov (!%p1430_p3, %s1106_s19), 1  ;;  %v1155_v31 = vpack.c.bf16 %v270_v29, %v262_v28  ;;  %v1141_v35 = vpack.c.bf16 %v267_v32, %v259_v30  ;;  %v276_v36 = vld [vmem:[%s1976_s1 + $0x188] sm:$0xff]  ;;  %v278_v38 = vld [vmem:[%s1976_s1 + $0x198] sm:$0xff]  ;;  %v1157_v39 = vpack.c.bf16 %v269_v34, %v261_v33  ;;  %v275_v42 = vld [vmem:[%s1976_s1 + $0x180] sm:$0xff] }
   0xe   : > { %1138 = vmatpush1.bf16.msra.mxu0 %v1137_v22  ;;  %v284_v37 = vld [vmem:[%s1976_s1 + $0x1c8] sm:$0xff]  ;;  %v286_v41 = vld [vmem:[%s1976_s1 + $0x1d8] sm:$0xff]  ;;  %v283_v43 = vld [vmem:[%s1976_s1 + $0x1c0] sm:$0xff]  ;;  %s1129_s15 = sshll.u32 %s1983_s19, 4 }
   0xf   : > { %1154 = vmatpush1.bf16.msra.mxu1 %v1153_v26  ;;  %1140 = vmatprep.subr.bf16.mxu0 %v1139_v27  ;;  %v1143_v40 = vpack.c.bf16 %v284_v37, %v276_v36  ;;  %v1159_v44 = vpack.c.bf16 %v286_v41, %v278_v38  ;;  %v277_v45 = vld [vmem:[%s1976_s1 + $0x190] sm:$0xff]  ;;  %v232_v47 = vld [vmem:[%s1976_s1 + $0x28] sm:$0xff]  ;;  %v234_v49 = vld [vmem:[%s1976_s1 + $0x38] sm:$0xff]  ;;  %v1145_v50 = vpack.c.bf16 %v283_v43, %v275_v42  ;;  %s1525_s27 = scalar_lea.vmem %s1975_s0, %s1129_s15  ;;  %s1130_s15 = sshll.u32 %s1983_s19, 6 }
  0x10   : > { %1156 = vmatprep.subr.bf16.mxu1 %v1155_v31  ;;  %v285_v46 = vld [vmem:[%s1976_s1 + $0x1d0] sm:$0xff]  ;;  %v240_v48 = vld [vmem:[%s1976_s1 + $0x68] sm:$0xff]  ;;  %v242_v51 = vld [vmem:[%s1976_s1 + $0x78] sm:$0xff]  ;;  %s224_s20 = scalar_lea.vmem %s1980_s5, %s1130_s15 }
  0x11   : > { %v1161_v52 = vpack.c.bf16 %v285_v46, %v277_v45  ;;  %v1163_v53 = vpack.c.bf16 %v240_v48, %v232_v47  ;;  %v231_v54 = vld [vmem:[%s1976_s1 + $0x20] sm:$0xff]  ;;  %v1179_v56 = vpack.c.bf16 %v242_v51, %v234_v49  ;;  %v233_v57 = vld [vmem:[%s1976_s1 + $0x30] sm:$0xff]  ;;  %v248_v59 = vld [vmem:[%s1976_s1 + $0xa8] sm:$0xff] }
  0x12   : > { %1142 = vmatpush1.bf16.msra.mxu0 %v1141_v35  ;;  %v239_v55 = vld [vmem:[%s1976_s1 + $0x60] sm:$0xff]  ;;  %v241_v58 = vld [vmem:[%s1976_s1 + $0x70] sm:$0xff]  ;;  %v256_v60 = vld [vmem:[%s1976_s1 + $0xe8] sm:$0xff] }
  0x13   : > { %1158 = vmatpush1.bf16.msra.mxu1 %v1157_v39  ;;  %1144 = vmatprep.subr.bf16.mxu0 %v1143_v40  ;;  %v1546_v61 = vld [vmem:[%s1525_s27] sm:$0xff]  ;;  %v1165_v62 = vpack.c.bf16 %v239_v55, %v231_v54  ;;  %v250_v63 = vld [vmem:[%s1976_s1 + $0xb8] sm:$0xff]  ;;  %v1181_v1 = vpack.c.bf16 %v241_v58, %v233_v57  ;;  %v249_v4 = vld [vmem:[%s1976_s1 + $0xb0] sm:$0xff]  ;;  %v1167_v5 = vpack.c.bf16 %v256_v60, %v248_v59 }
  0x14   : > { %1160 = vmatprep.subr.bf16.mxu1 %v1159_v44  ;;  %v258_v0 = vld [vmem:[%s1976_s1 + $0xf8] sm:$0xff]  ;;  %v247_v2 = vld [vmem:[%s1976_s1 + $0xa0] sm:$0xff]  ;;  %v257_v6 = vld [vmem:[%s1976_s1 + $0xf0] sm:$0xff] }
  0x15   : > { %v255_v3 = vld [vmem:[%s1976_s1 + $0xe0] sm:$0xff]  ;;  %v264_v8 = vld [vmem:[%s1976_s1 + $0x128] sm:$0xff]  ;;  %v1183_v10 = vpack.c.bf16 %v258_v0, %v250_v63  ;;  %v266_v11 = vld [vmem:[%s1976_s1 + $0x138] sm:$0xff]  ;;  %v1185_v15 = vpack.c.bf16 %v257_v6, %v249_v4 }
  0x16   : > { %1146 = vmatpush1.bf16.msra.mxu0 %v1145_v50  ;;  %v272_v9 = vld [vmem:[%s1976_s1 + $0x168] sm:$0xff]  ;;  %v274_v12 = vld [vmem:[%s1976_s1 + $0x178] sm:$0xff]  ;;  %v1169_v14 = vpack.c.bf16 %v255_v3, %v247_v2  ;;  %v263_v17 = vld [vmem:[%s1976_s1 + $0x120] sm:$0xff] }
  0x17   : > { %1162 = vmatpush1.bf16.msra.mxu1 %v1161_v52  ;;  %1164 = vmatprep.subr.bf16.mxu0 %v1163_v53  ;;  %v226_v13 = vld [vmem:[%s1525_s27 + $0x8] sm:$0xff]  ;;  %v1171_v16 = vpack.c.bf16 %v272_v9, %v264_v8  ;;  %v271_v18 = vld [vmem:[%s1976_s1 + $0x160] sm:$0xff]  ;;  %v265_v19 = vld [vmem:[%s1976_s1 + $0x130] sm:$0xff]  ;;  %v1187_v20 = vpack.c.bf16 %v274_v12, %v266_v11 }
  0x18   : > { %1180 = vmatprep.subr.bf16.mxu1 %v1179_v56  ;;  %v273_v21 = vld [vmem:[%s1976_s1 + $0x170] sm:$0xff]  ;;  %v280_v22 = vld [vmem:[%s1976_s1 + $0x1a8] sm:$0xff]  ;;  %v282_v24 = vld [vmem:[%s1976_s1 + $0x1b8] sm:$0xff]  ;;  %v1173_v26 = vpack.c.bf16 %v271_v18, %v263_v17 }
  0x19   : > { %1115 = vmatmul.mubr.msk.f32.vlgmr.msra.gmra.mrb[0].mxu0 %vm291_vm0, %v1546_v61  ;;  %v288_v23 = vld [vmem:[%s1976_s1 + $0x1e8] sm:$0xff]  ;;  %v290_v25 = vld [vmem:[%s1976_s1 + $0x1f8] sm:$0xff]  ;;  %v1189_v27 = vpack.c.bf16 %v273_v21, %v265_v19  ;;  %v279_v29 = vld [vmem:[%s1976_s1 + $0x1a0] sm:$0xff] }
  0x1a   : > { %1117 = vmatmul.mubr.msk.f32.vlgmr.msra.gmra.mrb[0].mxu1 %vm291_vm0, %v1546_v61  ;;  %1166 = vmatpush1.bf16.msra.mxu0 %v1165_v62  ;;  %v1175_v28 = vpack.c.bf16 %v288_v23, %v280_v22  ;;  %v287_v30 = vld [vmem:[%s1976_s1 + $0x1e0] sm:$0xff]  ;;  %v1191_v31 = vpack.c.bf16 %v290_v25, %v282_v24  ;;  %v281_v32 = vld [vmem:[%s1976_s1 + $0x1b0] sm:$0xff]  ;;  %v612_v36 = vld [vmem:[%s1978_s3 + $0x8] sm:$0xff] }
  0x1b   : > { %1182 = vmatpush1.bf16.msra.mxu1 %v1181_v1  ;;  %368 = vmatprep.mubr.f32.mxu0 %v1360_v7  ;;  %v289_v33 = vld [vmem:[%s1976_s1 + $0x1f0] sm:$0xff]  ;;  %v1177_v34 = vpack.c.bf16 %v287_v30, %v279_v29  ;;  %v614_v37 = vld [vmem:[%s1978_s3 + $0x18] sm:$0xff]  ;;  %v611_v38 = vld [vmem:[%s1978_s3] sm:$0xff] }
  0x1c   : > { %445 = vmatprep.mubr.f32.mxu1 %v1360_v7  ;;  %1168 = vmatprep.subr.bf16.mxu0 %v1167_v5  ;;  %v1193_v35 = vpack.c.bf16 %v289_v33, %v281_v32  ;;  %v1643_v39 = vpack.c.bf16 %v614_v37, %v612_v36  ;;  %v613_v40 = vld [vmem:[%s1978_s3 + $0x10] sm:$0xff]  ;;  %v616_v41 = vld [vmem:[%s1978_s3 + $0x28] sm:$0xff]  ;;  %v618_v42 = vld [vmem:[%s1978_s3 + $0x38] sm:$0xff] }
  0x1d   : > { %1116 = vmatmul.mubr.msk.f32.gmra.mrb[2].mxu0 %vm291_vm0, %v226_v13  ;;  %1184 = vmatprep.subr.bf16.mxu1 %v1183_v10  ;;  %v1654_v43 = vpack.c.bf16 %v613_v40, %v611_v38  ;;  %v1656_v44 = vpack.c.bf16 %v618_v42, %v616_v41  ;;  %v615_v45 = vld [vmem:[%s1978_s3 + $0x20] sm:$0xff]  ;;  %v617_v46 = vld [vmem:[%s1978_s3 + $0x30] sm:$0xff]  ;;  %v620_v47 = vld [vmem:[%s1978_s3 + $0x48] sm:$0xff] }
  0x1e   : > { %1118 = vmatmul.mubr.msk.f32.gmra.mrb[2].mxu1 %vm291_vm0, %v226_v13  ;;  %1170 = vmatpush1.bf16.msra.mxu0 %v1169_v14  ;;  %v622_v48 = vld [vmem:[%s1978_s3 + $0x58] sm:$0xff]  ;;  %v1672_v49 = vpack.c.bf16 %v617_v46, %v615_v45  ;;  %v619_v51 = vld [vmem:[%s1978_s3 + $0x40] sm:$0xff]  ;;  %v621_v52 = vld [vmem:[%s1978_s3 + $0x50] sm:$0xff] }
  0x1f   : > { %1186 = vmatpush1.bf16.msra.mxu1 %v1185_v15  ;;  %1172 = vmatprep.subr.bf16.mxu0 %v1171_v16  ;;  %v1675_v50 = vpack.c.bf16 %v622_v48, %v620_v47  ;;  %v624_v53 = vld [vmem:[%s1978_s3 + $0x68] sm:$0xff]  ;;  %v626_v54 = vld [vmem:[%s1978_s3 + $0x78] sm:$0xff]  ;;  %v1690_v55 = vpack.c.bf16 %v621_v52, %v619_v51  ;;  %v623_v57 = vld [vmem:[%s1978_s3 + $0x60] sm:$0xff] }
  0x20   : > { %1188 = vmatprep.subr.bf16.mxu1 %v1187_v20  ;;  %516 = vmatprep.mubr.f32.mxu0 %v1360_v7  ;;  %v1693_v56 = vpack.c.bf16 %v626_v54, %v624_v53  ;;  %v625_v58 = vld [vmem:[%s1978_s3 + $0x70] sm:$0xff]  ;;  %v628_v59 = vld [vmem:[%s1978_s3 + $0x88] sm:$0xff]  ;;  %v630_v60 = vld [vmem:[%s1978_s3 + $0x98] sm:$0xff] }
  0x21   : > { %593 = vmatprep.mubr.f32.mxu1 %v1360_v7  ;;  %v1711_v62 = vpack.c.bf16 %v630_v60, %v628_v59  ;;  %v627_v63 = vld [vmem:[%s1978_s3 + $0x80] sm:$0xff]  ;;  %v629_v0 = vld [vmem:[%s1978_s3 + $0x90] sm:$0xff]  ;;  %v632_v1 = vld [vmem:[%s1978_s3 + $0xa8] sm:$0xff] }
  0x22   : > { %1174 = vmatpush1.bf16.msra.mxu0 %v1173_v26  ;;  %v634_v2 = vld [vmem:[%s1978_s3 + $0xb8] sm:$0xff]  ;;  %v1726_v3 = vpack.c.bf16 %v629_v0, %v627_v63  ;;  %v631_v5 = vld [vmem:[%s1978_s3 + $0xa0] sm:$0xff]  ;;  %v633_v6 = vld [vmem:[%s1978_s3 + $0xb0] sm:$0xff] }
  0x23   : > { %1190 = vmatpush1.bf16.msra.mxu1 %v1189_v27  ;;  %1176 = vmatprep.subr.bf16.mxu0 %v1175_v28  ;;  %v1729_v4 = vpack.c.bf16 %v634_v2, %v632_v1  ;;  %v636_v8 = vld [vmem:[%s1978_s3 + $0xc8] sm:$0xff]  ;;  %v638_v9 = vld [vmem:[%s1978_s3 + $0xd8] sm:$0xff]  ;;  %v1744_v10 = vpack.c.bf16 %v633_v6, %v631_v5  ;;  %v635_v12 = vld [vmem:[%s1978_s3 + $0xc0] sm:$0xff] }
  0x24   : > { %1192 = vmatprep.subr.bf16.mxu1 %v1191_v31  ;;  %v1747_v11 = vpack.c.bf16 %v638_v9, %v636_v8  ;;  %v640_v14 = vld [vmem:[%s1978_s3 + $0xe8] sm:$0xff]  ;;  %v642_v15 = vld [vmem:[%s1978_s3 + $0xf8] sm:$0xff]  ;;  %v639_v18 = vld [vmem:[%s1978_s3 + $0xe0] sm:$0xff] }
  0x25   : > { %v1765_v17 = vpack.c.bf16 %v642_v15, %v640_v14  ;;  %v641_v19 = vld [vmem:[%s1978_s3 + $0xf0] sm:$0xff]  ;;  %v644_v20 = vld [vmem:[%s1978_s3 + $0x108] sm:$0xff]  ;;  %v646_v21 = vld [vmem:[%s1978_s3 + $0x118] sm:$0xff] }
  0x26   : > { %1178 = vmatpush1.bf16.msra.mxu0 %v1177_v34  ;;  %v1780_v22 = vpack.c.bf16 %v641_v19, %v639_v18  ;;  %v1783_v23 = vpack.c.bf16 %v646_v21, %v644_v20  ;;  %v643_v24 = vld [vmem:[%s1978_s3 + $0x100] sm:$0xff]  ;;  %v645_v25 = vld [vmem:[%s1978_s3 + $0x110] sm:$0xff]  ;;  %v608_v59 = vld [vmem:[%s1977_s2 + $0x8] sm:$0xff] }
  0x27   : > { %1194 = vmatpush1.bf16.msra.mxu1 %v1193_v35  ;;  %v1245_v26 = vpack.c.bf16 %v645_v25, %v643_v24  ;;  %v652_v60 = vld [vmem:[%s1978_s3 + $0x148] sm:$0xff]  ;;  %v651_v63 = vld [vmem:[%s1978_s3 + $0x140] sm:$0xff]  ;;  %v653_v0 = vld [vmem:[%s1978_s3 + $0x150] sm:$0xff] }
  0x28   : > { %1212 = vmatprep.subr.bf16.mxu1 %v1643_v39  ;;  %v1253_v1 = vpack.c.bf16 %v653_v0, %v651_v63  ;;  %v656_v2 = vld [vmem:[%s1978_s3 + $0x168] sm:$0xff]  ;;  %v655_v5 = vld [vmem:[%s1978_s3 + $0x160] sm:$0xff]  ;;  %v657_v6 = vld [vmem:[%s1978_s3 + $0x170] sm:$0xff] }
  0x29   : > { %1119 = vmatmul.mubr.msk.f32.vlgmr.msra.gmra.mrb[4].mxu0 %vm291_vm0, %v1546_v61  ;;  %v1257_v8 = vpack.c.bf16 %v657_v6, %v655_v5  ;;  %v660_v9 = vld [vmem:[%s1978_s3 + $0x188] sm:$0xff]  ;;  %v663_v18 = vld [vmem:[%s1978_s3 + $0x1a0] sm:$0xff]  ;;  %v665_v19 = vld [vmem:[%s1978_s3 + $0x1b0] sm:$0xff] }
  0x2a   : > { %1121 = vmatmul.mubr.msk.f32.vlgmr.msra.gmra.mrb[4].mxu1 %vm291_vm0, %v1546_v61  ;;  %522 = vmatprep.mubr.f32.mxu0 %v1360_v7  ;;  %v1708_v61 = vpack.c.bf16 %v625_v58, %v623_v57  ;;  %v607_v58 = vld [vmem:[%s1977_s2] sm:$0xff]  ;;  %v664_v15 = vld [vmem:[%s1978_s3 + $0x1a8] sm:$0xff]  ;;  %v1265_v20 = vpack.c.bf16 %v665_v19, %v663_v18  ;;  %v669_v25 = vld [vmem:[%s1978_s3 + $0x1d0] sm:$0xff] }
  0x2b   : > { %599 = vmatprep.mubr.f32.mxu1 %v1360_v7  ;;  %1214 = vmatpush1.bf16.msra.mxu1 %v1654_v43  ;;  %v668_v21 = vld [vmem:[%s1978_s3 + $0x1c8] sm:$0xff]  ;;  %v667_v24 = vld [vmem:[%s1978_s3 + $0x1c0] sm:$0xff] }
  0x2c   : > { %1216 = vmatprep.subr.bf16.mxu1 %v1656_v44 }
  0x2d   : > { %1120 = vmatmul.mubr.msk.f32.gmra.mrb[6].mxu0 %vm291_vm0, %v226_v13 }
  0x2e   : > { %1122 = vmatmul.mubr.msk.f32.gmra.mrb[6].mxu1 %vm291_vm0, %v226_v13  ;;  %751 = vmatprep.mubr.f32.mxu0 %v1360_v7  ;;  %v637_v13 = vld [vmem:[%s1978_s3 + $0xd0] sm:$0xff] }
  0x2f   : > { %1218 = vmatpush1.bf16.msra.mxu1 %v1672_v49  ;;  %v1762_v16 = vpack.c.bf16 %v637_v13, %v635_v12  ;;  %v659_v12 = vld [vmem:[%s1978_s3 + $0x180] sm:$0xff]  ;;  %v661_v13 = vld [vmem:[%s1978_s3 + $0x190] sm:$0xff] }
  0x30   : > { %1220 = vmatprep.subr.bf16.mxu1 %v1675_v50  ;;  %v1261_v14 = vpack.c.bf16 %v661_v13, %v659_v12 }
  0x33   : > { %1222 = vmatpush1.bf16.msra.mxu1 %v1690_v55 }
  0x34   : > { %1224 = vmatprep.subr.bf16.mxu1 %v1693_v56 }
  0x37   : > { %1226 = vmatpush1.bf16.msra.mxu1 %v1708_v61 }
  0x38   : > { %1228 = vmatprep.subr.bf16.mxu1 %v1711_v62 }
  0x3b   : > { %1230 = vmatpush1.bf16.msra.mxu1 %v1726_v3 }
  0x3c   : > { %1232 = vmatprep.subr.bf16.mxu1 %v1729_v4 }
  0x3f   : > { %1234 = vmatpush1.bf16.msra.mxu1 %v1744_v10 }
  0x40   : > { %1236 = vmatprep.subr.bf16.mxu1 %v1747_v11 }
  0x43   : > { %1238 = vmatpush1.bf16.msra.mxu1 %v1762_v16 }
  0x44   : > { %1240 = vmatprep.subr.bf16.mxu1 %v1765_v17 }
  0x47   : > { %1242 = vmatpush1.bf16.msra.mxu1 %v1780_v22 }
  0x48   : > { %1244 = vmatprep.subr.bf16.mxu1 %v1783_v23 }
  0x4b   : > { %1246 = vmatpush1.bf16.msra.mxu1 %v1245_v26 }
  0xec   : > { %v364_v27 = vpop.f32.mrb[0].mxu0 }
  0xed   : > { %v366_v28 = vpop.f32.mrb[1].mxu0  ;;  %v441_v29 = vpop.f32.mrb[0].mxu1 }
  0xee   : > { %v443_v30 = vpop.f32.mrb[1].mxu1 }
  0xf0   : > { %v370_v31 = vpop.f32.mrb[2].mxu0 }
  0xf1   : > { %v1197_v32 = vpack.c.bf16 %v370_v31, %v364_v27  ;;  %v447_v33 = vpop.f32.mrb[2].mxu1  ;;  %v372_v34 = vpop.f32.mrb[3].mxu0  ;;  %v672_v27 = vld [vmem:[%s1978_s3 + $0x1e8] sm:$0xff]  ;;  %v673_v31 = vld [vmem:[%s1978_s3 + $0x1f0] sm:$0xff] }
  0xf2   : > { %v1201_v35 = vpack.c.bf16 %v447_v33, %v441_v29  ;;  %v1195_v36 = vpack.c.bf16 %v372_v34, %v366_v28  ;;  %v449_v37 = vpop.f32.mrb[3].mxu1  ;;  %v674_v28 = vld [vmem:[%s1978_s3 + $0x1f8] sm:$0xff] }
  0xf3   : > { %v1199_v38 = vpack.c.bf16 %v449_v37, %v443_v30  ;;  %v1271_v29 = vpack.c.bf16 %v674_v28, %v672_v27  ;;  %v671_v30 = vld [vmem:[%s1978_s3 + $0x1e0] sm:$0xff] }
  0xf4   : > { %1196 = vmatprep.subr.bf16.mxu0 %v1195_v36 }
  0xf5   : > { %1198 = vmatpush1.bf16.msra.mxu0 %v1197_v32  ;;  %v1273_v32 = vpack.c.bf16 %v673_v31, %v671_v30 }
  0xf6   : > { %1200 = vmatprep.subr.bf16.mxu0 %v1199_v38 }
  0xf9   : > { %1202 = vmatpush1.bf16.msra.mxu0 %v1201_v35 }
  0xfc   : > { %v518_v40 = vpop.f32.mrb[4].mxu0 }
  0xfd   : > { %v520_v41 = vpop.f32.mrb[5].mxu0  ;;  %v595_v42 = vpop.f32.mrb[4].mxu1 }
  0xfe   : > { %v597_v45 = vpop.f32.mrb[5].mxu1 }
 0x100   : > { %v524_v46 = vpop.f32.mrb[6].mxu0 }
 0x101   : > { %v1205_v47 = vpack.c.bf16 %v524_v46, %v518_v40  ;;  %v601_v48 = vpop.f32.mrb[6].mxu1  ;;  %v526_v51 = vpop.f32.mrb[7].mxu0 }
 0x102   : > { %v1209_v52 = vpack.c.bf16 %v601_v48, %v595_v42  ;;  %v1203_v53 = vpack.c.bf16 %v526_v51, %v520_v41  ;;  %v603_v54 = vpop.f32.mrb[7].mxu1 }
 0x103   : > { %v1207_v57 = vpack.c.bf16 %v603_v54, %v597_v45 }
 0x104   : > { %1204 = vmatprep.subr.bf16.mxu0 %v1203_v53 }
 0x105   : > { %1206 = vmatpush1.bf16.msra.mxu0 %v1205_v47 }
 0x106   : > { %1208 = vmatprep.subr.bf16.mxu0 %v1207_v57 }
 0x109   : > { %1210 = vmatpush1.bf16.msra.mxu0 %v1209_v52 }
 0x10a   : > { %1276 = vmatprep.subr.bf16.mxu0 %v1643_v39  ;;  %v609_v39 = vld [vmem:[%s1977_s2 + $0x10] sm:$0xff] }
 0x10c   : > { %1123 = vmatmul.mubr.msk.f32.vlgmr.msra.gmra.mrb[8].mxu0 %vm291_vm0, %v607_v58 }
 0x10d   : > { %757 = vmatprep.mubr.f32.mxu0 %v1360_v7  ;;  %1278 = vmatpush1.bf16.msra.mxu0 %v1654_v43  ;;  %v610_v43 = vld [vmem:[%s1977_s2 + $0x18] sm:$0xff] }
 0x10e   : > { %1280 = vmatprep.subr.bf16.mxu0 %v1656_v44  ;;  %v650_v44 = vld [vmem:[%s1978_s3 + $0x138] sm:$0xff] }
 0x110   : > { %1124 = vmatmul.mubr.msk.f32.gmra.mrb[10].mxu0 %vm291_vm0, %v608_v59 }
 0x111   : > { %763 = vmatprep.mubr.f32.mxu0 %v1360_v7  ;;  %1282 = vmatpush1.bf16.msra.mxu0 %v1672_v49 }
 0x112   : > { %1284 = vmatprep.subr.bf16.mxu0 %v1675_v50  ;;  %v647_v50 = vld [vmem:[%s1978_s3 + $0x120] sm:$0xff] }
 0x114   : > { %1125 = vmatmul.mubr.msk.f32.gmra.mrb[12].mxu0 %vm291_vm0, %v609_v39 }
 0x115   : > { %769 = vmatprep.mubr.f32.mxu0 %v1360_v7  ;;  %1286 = vmatpush1.bf16.msra.mxu0 %v1690_v55  ;;  %v648_v7 = vld [vmem:[%s1978_s3 + $0x128] sm:$0xff]  ;;  %v649_v55 = vld [vmem:[%s1978_s3 + $0x130] sm:$0xff] }
 0x116   : > { %1288 = vmatprep.subr.bf16.mxu0 %v1693_v56  ;;  %v1247_v49 = vpack.c.bf16 %v650_v44, %v648_v7  ;;  %v1249_v56 = vpack.c.bf16 %v649_v55, %v647_v50 }
 0x118   : > { %1126 = vmatmul.mubr.msk.f32.gmra.mrb[14].mxu0 %vm291_vm0, %v610_v43  ;;  %1248 = vmatprep.subr.bf16.mxu1 %v1247_v49 }
 0x119   : > { %1290 = vmatpush1.bf16.msra.mxu0 %v1708_v61  ;;  %1250 = vmatpush1.bf16.msra.mxu1 %v1249_v56  ;;  %v654_v61 = vld [vmem:[%s1978_s3 + $0x158] sm:$0xff] }
 0x11a   : > { %1292 = vmatprep.subr.bf16.mxu0 %v1711_v62  ;;  %v1251_v62 = vpack.c.bf16 %v654_v61, %v652_v60 }
 0x11c   : > { %1252 = vmatprep.subr.bf16.mxu1 %v1251_v62 }
 0x11d   : > { %1294 = vmatpush1.bf16.msra.mxu0 %v1726_v3  ;;  %1254 = vmatpush1.bf16.msra.mxu1 %v1253_v1  ;;  %v658_v3 = vld [vmem:[%s1978_s3 + $0x178] sm:$0xff] }
 0x11e   : > { %1296 = vmatprep.subr.bf16.mxu0 %v1729_v4  ;;  %v1255_v4 = vpack.c.bf16 %v658_v3, %v656_v2 }
 0x120   : > { %1256 = vmatprep.subr.bf16.mxu1 %v1255_v4 }
 0x121   : > { %1298 = vmatpush1.bf16.msra.mxu0 %v1744_v10  ;;  %1258 = vmatpush1.bf16.msra.mxu1 %v1257_v8  ;;  %v662_v10 = vld [vmem:[%s1978_s3 + $0x198] sm:$0xff] }
 0x122   : > { %1300 = vmatprep.subr.bf16.mxu0 %v1747_v11  ;;  %v1259_v11 = vpack.c.bf16 %v662_v10, %v660_v9 }
 0x124   : > { %1260 = vmatprep.subr.bf16.mxu1 %v1259_v11 }
 0x125   : > { %1302 = vmatpush1.bf16.msra.mxu0 %v1762_v16  ;;  %1262 = vmatpush1.bf16.msra.mxu1 %v1261_v14  ;;  %v666_v16 = vld [vmem:[%s1978_s3 + $0x1b8] sm:$0xff] }
 0x126   : > { %1304 = vmatprep.subr.bf16.mxu0 %v1765_v17  ;;  %v1263_v17 = vpack.c.bf16 %v666_v16, %v664_v15 }
 0x128   : > { %1264 = vmatprep.subr.bf16.mxu1 %v1263_v17 }
 0x129   : > { %1306 = vmatpush1.bf16.msra.mxu0 %v1780_v22  ;;  %1266 = vmatpush1.bf16.msra.mxu1 %v1265_v20  ;;  %v670_v22 = vld [vmem:[%s1978_s3 + $0x1d8] sm:$0xff] }
 0x12a   : > { %1308 = vmatprep.subr.bf16.mxu0 %v1783_v23  ;;  %v1267_v23 = vpack.c.bf16 %v670_v22, %v668_v21  ;;  %v972_v21 = vlaneseq }
 0x12c   : > { %1268 = vmatprep.subr.bf16.mxu1 %v1267_v23  ;;  %v973_v22 = vshrl.u32 %v972_v21, 7 }
 0x12d   : > { %1310 = vmatpush1.bf16.msra.mxu0 %v1245_v26  ;;  %v1269_v26 = vpack.c.bf16 %v669_v25, %v667_v24 }
 0x12e   : > { %1312 = vmatprep.subr.bf16.mxu0 %v1247_v49 }
 0x12f   : > { %1270 = vmatpush1.bf16.msra.mxu1 %v1269_v26 }
 0x130   : > { %1272 = vmatprep.subr.bf16.mxu1 %v1271_v29 }
 0x131   : > { %1314 = vmatpush1.bf16.msra.mxu0 %v1249_v56 }
 0x132   : > { %1316 = vmatprep.subr.bf16.mxu0 %v1251_v62 }
 0x133   : > { %1274 = vmatpush1.bf16.msra.mxu1 %v1273_v32 }
 0x135   : > { %1318 = vmatpush1.bf16.msra.mxu0 %v1253_v1 }
 0x136   : > { %1320 = vmatprep.subr.bf16.mxu0 %v1255_v4 }
 0x139   : > { %1322 = vmatpush1.bf16.msra.mxu0 %v1257_v8 }
 0x13a   : > { %1324 = vmatprep.subr.bf16.mxu0 %v1259_v11 }
 0x13d   : > { %1326 = vmatpush1.bf16.msra.mxu0 %v1261_v14 }
 0x13e   : > { %1328 = vmatprep.subr.bf16.mxu0 %v1263_v17 }
 0x141   : > { %1330 = vmatpush1.bf16.msra.mxu0 %v1265_v20 }
 0x142   : > { %1332 = vmatprep.subr.bf16.mxu0 %v1267_v23  ;;  %v974_v23 = vsub.s32 0, %v973_v22 }
 0x145   : > { %1334 = vmatpush1.bf16.msra.mxu0 %v1269_v26 }
 0x146   : > { %1336 = vmatprep.subr.bf16.mxu0 %v1271_v29 }
 0x149   : > { %1338 = vmatpush1.bf16.msra.mxu0 %v1273_v32 }
 0x1df   : > { %v1913_v33 = vpop.f32.mrb[8].mxu0 }
 0x1e0   : > { %v1915_v34 = vpop.f32.mrb[9].mxu0  ;;  %v794_v36 = vmul.f32 %v1913_v33, %v1913_v33 }
 0x1e1   : > { %v795_v41 = vmul.f32 %v1915_v34, %v1915_v34 }
 0x1e3   : > { %v1917_v35 = vpop.f32.mrb[10].mxu0 }
 0x1e4   : > { %v776_v37 = vadd.f32 %v1917_v35, %v1913_v33  ;;  %v796_v38 = vmul.f32 %v1917_v35, %v1917_v35  ;;  %v1925_v40 = vpop.f32.mrb[11].mxu0 }
 0x1e5   : > { %v785_v42 = vadd.f32 %v1925_v40, %v1915_v34  ;;  %v797_v45 = vmul.f32 %v1925_v40, %v1925_v40 }
 0x1e6   : > { %v802_v46 = vadd.f32 %v796_v38, %v794_v36 }
 0x1e7   : > { %v811_v47 = vadd.f32 %v797_v45, %v795_v41  ;;  %v1933_v48 = vpop.f32.mrb[12].mxu0 }
 0x1e8   : > { %v777_v51 = vadd.f32 %v776_v37, %v1933_v48  ;;  %v798_v52 = vmul.f32 %v1933_v48, %v1933_v48  ;;  %v1938_v53 = vpop.f32.mrb[13].mxu0 }
 0x1e9   : > { %v786_v54 = vadd.f32 %v785_v42, %v1938_v53  ;;  %v799_v57 = vmul.f32 %v1938_v53, %v1938_v53 }
 0x1ea   : > { %v803_v58 = vadd.f32 %v802_v46, %v798_v52 }
 0x1eb   : > { %v812_v59 = vadd.f32 %v811_v47, %v799_v57  ;;  %v1943_v39 = vpop.f32.mrb[14].mxu0 }
 0x1ec   : > { %v778_v43 = vadd.f32 %v777_v51, %v1943_v39  ;;  %v800_v7 = vmul.f32 %v1943_v39, %v1943_v39  ;;  %v1948_v44 = vpop.f32.mrb[15].mxu0 }
 0x1ed   : > { %v787_v49 = vadd.f32 %v786_v54, %v1948_v44  ;;  %v801_v50 = vmul.f32 %v1948_v44, %v1948_v44 }
 0x1ee   : > { %v779_v55 = vrot.slane %v778_v43, 4  ;;  %v804_v56 = vadd.f32 %v803_v58, %v800_v7 }
 0x1ef   : > { %v788_v60 = vrot.slane %v787_v49, 4  ;;  %v813_v61 = vadd.f32 %v812_v59, %v801_v50 }
 0x1f0   : > { %v780_v62 = vadd.f32 %v779_v55, %v778_v43  ;;  %v805_v63 = vrot.slane %v804_v56, 4 }
 0x1f1   : > { %v789_v0 = vadd.f32 %v788_v60, %v787_v49  ;;  %v814_v1 = vrot.slane %v813_v61, 4 }
 0x1f2   : > { %v781_v2 = vrot.slane %v780_v62, 2  ;;  %v806_v3 = vadd.f32 %v805_v63, %v804_v56 }
 0x1f3   : > { %v790_v4 = vrot.slane %v789_v0, 2  ;;  %v815_v5 = vadd.f32 %v814_v1, %v813_v61 }
 0x1f4   : > { %v782_v6 = vadd.f32 %v781_v2, %v780_v62  ;;  %v807_v8 = vrot.slane %v806_v3, 2 }
 0x1f5   : > { %v791_v9 = vadd.f32 %v790_v4, %v789_v0  ;;  %v816_v10 = vrot.slane %v815_v5, 2 }
 0x1f6   : > { %v783_v11 = vrot.slane %v782_v6, 1  ;;  %v808_v12 = vadd.f32 %v807_v8, %v806_v3 }
 0x1f7   : > { %v792_v13 = vrot.slane %v791_v9, 1  ;;  %v817_v14 = vadd.f32 %v816_v10, %v815_v5 }
 0x1f8   : > { %v809_v15 = vrot.slane %v808_v12, 1  ;;  %v784_v18 = vadd.f32 %v783_v11, %v782_v6 }
 0x1f9   : > { %v793_v16 = vadd.f32 %v792_v13, %v791_v9  ;;  %v818_v17 = vrot.slane %v817_v14, 1 }
 0x1fa   : > { %v810_v20 = vadd.f32 %v809_v15, %v808_v12 }
 0x1fb   : > { %884 = vmatprep.mubr.f32.mxu1 %v793_v16  ;;  %v819_v19 = vadd.f32 %v818_v17, %v817_v14 }
 0x1fc   : > { %885 = vmatmul.mubr.f32.vlgmr.msra.gmra.mrb[8].mxu1 %v784_v18 }
 0x1fd   : > { %957 = vmatprep.mubr.f32.mxu0 %v819_v19 }
 0x1fe   : > { %958 = vmatmul.mubr.f32.vlgmr.msra.gmra.mrb[16].mxu0 %v810_v20 }
 0x2cf   : > { %v886_v24 = vpop.f32.mrb[8].mxu1 }
 0x2d0   : > { %v891_v25 = vmul.f32 0.0009765625, %v886_v24  ;;  %v888_v26 = vpop.f32.mrb[9].mxu1 }
 0x2d1   : > { %v892_v27 = vmul.f32 0.0009765625, %v888_v26  ;;  %v959_v28 = vpop.f32.mrb[16].mxu0 }
 0x2d2   : > { %v966_v29 = vmul.f32 %v891_v25, %v891_v25  ;;  %v975_v30 = vrot.slane %v891_v25, %v974_v23  ;;  %v964_v31 = vmul.f32 0.0009765625, %v959_v28  ;;  %v961_v32 = vpop.f32.mrb[17].mxu0 }
 0x2d3   : > { %v967_v36 = vmul.f32 %v892_v27, %v892_v27  ;;  %v979_v37 = vrot.slane %v892_v27, %v974_v23  ;;  %v965_v38 = vmul.f32 0.0009765625, %v961_v32 }
 0x2d4   : > { %v980_v41 = vsub.f32 %v1913_v33, %v975_v30  ;;  %v982_v42 = vsub.f32 %v1917_v35, %v975_v30  ;;  %v984_v45 = vsub.f32 %v1933_v48, %v975_v30  ;;  %v986_v46 = vsub.f32 %v1943_v39, %v975_v30 }
 0x2d5   : > { %v981_v47 = vsub.f32 %v1915_v34, %v979_v37  ;;  %v983_v51 = vsub.f32 %v1925_v40, %v979_v37  ;;  %v985_v52 = vsub.f32 %v1938_v53, %v979_v37  ;;  %v987_v54 = vsub.f32 %v1948_v44, %v979_v37  ;;  %v606_v34 = vld [vmem:[%s1979_s4] sm:$0x3] }
 0x2d6   : > { %v968_v57 = vsub.f32 %v964_v31, %v966_v29  ;;  %v969_v58 = vsub.f32 %v965_v38, %v967_v36  ;;  %v1023_v35 = vsub.s32 1, %v973_v22  ;;  %v1020_v53 = vrot.slane %v606_v34, %v974_v23 }
 0x2d8   : > { %v970_v59 = vmax.f32 %v968_v57, 0.0  ;;  %v971_v43 = vmax.f32 %v969_v58, 0.0  ;;  %v1024_v49 = vrot.slane %v606_v34, %v1023_v35 }
 0x2da   : > { %v988_v33 = vadd.f32 1e-05, %v970_v59  ;;  %v989_v7 = vadd.f32 1e-05, %v971_v43 }
 0x2dc   : > { %1348 = vrsqrt.f32 %v988_v33 }
 0x2dd   : > { %1350 = vrsqrt.f32 %v989_v7 }
 0x2e6   : > { %v1349_v48 = vpop.eup %1348 }
 0x2e7   : > { %v1351_v40 = vpop.eup %1350  ;;  %v995_v39 = vrot.slane %v1349_v48, %v974_v23 }
 0x2e8   : > { %v999_v44 = vrot.slane %v1351_v40, %v974_v23 }
 0x2e9   : > { %v1000_v50 = vmul.f32 %v995_v39, %v980_v41  ;;  %v1002_v55 = vmul.f32 %v995_v39, %v982_v42  ;;  %v1004_v56 = vmul.f32 %v995_v39, %v984_v45  ;;  %v1006_v60 = vmul.f32 %v995_v39, %v986_v46 }
 0x2ea   : > { %v1001_v61 = vmul.f32 %v999_v44, %v981_v47  ;;  %v1003_v62 = vmul.f32 %v999_v44, %v983_v51  ;;  %v1005_v63 = vmul.f32 %v999_v44, %v985_v52  ;;  %v1007_v0 = vmul.f32 %v999_v44, %v987_v54 }
 0x2eb   : > { %vm1008_vm1 = vcmp.ge.f32.partialorder %v1000_v50, 0.0  ;;  %vm1010_vm2 = vcmp.ge.f32.partialorder %v1002_v55, 0.0  ;;  %vm1012_vm3 = vcmp.ge.f32.partialorder %v1004_v56, 0.0  ;;  %vm1014_vm4 = vcmp.ge.f32.partialorder %v1006_v60, 0.0 }
 0x2ec   : > { %v1027_v1 = vmul.f32 %v1020_v53, %v1000_v50  ;;  %v1029_v2 = vmul.f32 %v1020_v53, %v1002_v55  ;;  %v1031_v3 = vmul.f32 %v1020_v53, %v1004_v56  ;;  %v1033_v4 = vmul.f32 %v1020_v53, %v1006_v60 }
 0x2ed   : > { %vm1009_vm5 = vcmp.ge.f32.partialorder %v1001_v61, 0.0  ;;  %vm1011_vm6 = vcmp.ge.f32.partialorder %v1003_v62, 0.0  ;;  %vm1013_vm7 = vcmp.ge.f32.partialorder %v1005_v63, 0.0  ;;  %vm1015_vm8 = vcmp.ge.f32.partialorder %v1007_v0, 0.0 }
 0x2ee   : > { %v1035_v5 = vsel %vm1008_vm1, %v1000_v50, %v1027_v1  ;;  %v1037_v6 = vsel %vm1010_vm2, %v1002_v55, %v1029_v2  ;;  %v1039_v8 = vsel %vm1012_vm3, %v1004_v56, %v1031_v3  ;;  %v1041_v9 = vsel %vm1014_vm4, %v1006_v60, %v1033_v4 }
 0x2ef   : > { %1043 = vst [vmem:[%s224_s20] sm:$0xff] %v1035_v5  ;;  %1045 = vst [vmem:[%s224_s20 + $0x10] sm:$0xff] %v1037_v6  ;;  %v1028_v10 = vmul.f32 %v1024_v49, %v1001_v61  ;;  %v1030_v11 = vmul.f32 %v1024_v49, %v1003_v62  ;;  %v1032_v12 = vmul.f32 %v1024_v49, %v1005_v63 }
 0x2f0   : > { %1047 = vst [vmem:[%s224_s20 + $0x20] sm:$0xff] %v1039_v8  ;;  %1049 = vst [vmem:[%s224_s20 + $0x30] sm:$0xff] %v1041_v9  ;;  %v1034_v13 = vmul.f32 %v1024_v49, %v1007_v0 }
 0x2f1   : > { %v1036_v14 = vsel %vm1009_vm5, %v1001_v61, %v1028_v10  ;;  %v1038_v15 = vsel %vm1011_vm6, %v1003_v62, %v1030_v11  ;;  %v1040_v16 = vsel %vm1013_vm7, %v1005_v63, %v1032_v12 }
 0x2f2   : > { %v1042_v17 = vsel %vm1015_vm8, %v1007_v0, %v1034_v13  ;;  %1044 = vst [vmem:[%s224_s20 + $0x8] sm:$0xff] %v1036_v14  ;;  %1046 = vst [vmem:[%s224_s20 + $0x18] sm:$0xff] %v1038_v15 }
 0x2f3   : > { %1048 = vst [vmem:[%s224_s20 + $0x28] sm:$0xff] %v1040_v16  ;;  %1050 = vst [vmem:[%s224_s20 + $0x38] sm:$0xff] %v1042_v17 }
 0x2f4 PF: > { %s15_s18 = sadd.s32 1, %s1358_s18  }
 0x2f5   : > { %p12_p4 = scmp.ge.s32.totalorder %s15_s18, 4  }
 0x2f7   :  { %14 = sbr.rel (!%p12_p4) target bundleno = 1 (0x1), region = 70 }

</bundles_post_ra>
